<compile_context>
chip_gen: v7x
topology: tpu7x:2x2x1
jax: 0.10.0
libtpu: 0.0.40
codegen_flags: <defaults>
</compile_context>

<pallas_src>
import functools

import jax
import jax.numpy as jnp
import numpy as np
from jax.experimental import pallas as pl
from jax.experimental.pallas import tpu as pltpu

H1 = 256        # conv1 output features
H2 = 128        # conv2 output features
OUT_PAD = 128   # final linear output padded 1 -> 128 (lane-dense stores)

_VMEM = pl.BlockSpec(memory_space=pltpu.MemorySpace.VMEM)


# ----------------------------- Pallas kernels --------------------------------

def _gcn_trunk(a, x_ref, w1_ref, b1_ref, w2_ref, b2_ref):
    """conv1 -> relu -> conv2 -> relu, all VMEM-resident.

    bf16 MXU operands, f32 accumulation (preferred_element_type), f32 VPU
    epilogues.
    """
    x = x_ref[...].astype(jnp.bfloat16)                        # in-kernel cast (VPU)

    # --- Layer 1, re-associated: relu((A @ X) @ W1 + b1) ---
    ax = jnp.dot(a, x, preferred_element_type=jnp.float32)     # (N, F)  f32
    h1 = jnp.dot(ax.astype(jnp.bfloat16), w1_ref[...],
                 preferred_element_type=jnp.float32)           # (N, H1) f32
    h1 = jnp.maximum(h1 + b1_ref[...], 0.0)

    # F.dropout(p=0.5, training=False) -> identity (eval mode)

    # --- Layer 2: relu(A @ (h1 @ W2) + b2) ---
    xw2 = jnp.dot(h1.astype(jnp.bfloat16), w2_ref[...],
                  preferred_element_type=jnp.float32)          # (N, H2) f32
    h2 = jnp.dot(a, xw2.astype(jnp.bfloat16),
                 preferred_element_type=jnp.float32)           # (N, H2) f32
    return jnp.maximum(h2 + b2_ref[...], 0.0)


def _gcn_logits_kernel(a_ref, x_ref, w1_ref, b1_ref, w2_ref, b2_ref,
                       wfc_ref, bfc_ref, out_ref):
    h2 = _gcn_trunk(a_ref[...], x_ref, w1_ref, b1_ref, w2_ref, b2_ref)
    # Final Linear; columns zero-padded to OUT_PAD -> unmasked lane-dense vst.
    out = jnp.dot(h2.astype(jnp.bfloat16), wfc_ref[...],
                  preferred_element_type=jnp.float32)          # (N, OUT_PAD)
    out_ref[...] = out + bfc_ref[...]


def _gcn_lastlayer_kernel(a_ref, x_ref, w1_ref, b1_ref, w2_ref, b2_ref,
                          h2_ref):
    h2_ref[...] = _gcn_trunk(a_ref[...], x_ref, w1_ref, b1_ref, w2_ref, b2_ref)


def _logits_call(a_bf16, x, w1, b1, w2, b2, wfc, bfc):
    n = a_bf16.shape[0]
    f = x.shape[1]
    flops = 2 * n * (n * f + f * H1 + H1 * H2 + n * H2 + H2 * OUT_PAD)
    bytes_accessed = (n * n * 2 + n * f * 4 + f * H1 * 2 + H1 * 4
                      + H1 * H2 * 2 + H2 * 4 + H2 * OUT_PAD * 2 + OUT_PAD * 4
                      + n * OUT_PAD * 4)
    return pl.pallas_call(
        _gcn_logits_kernel,
        in_specs=[_VMEM] * 8,
        out_specs=_VMEM,
        out_shape=jax.ShapeDtypeStruct((n, OUT_PAD), jnp.float32),
        cost_estimate=pl.CostEstimate(flops=flops, transcendentals=0,
                                      bytes_accessed=bytes_accessed),
    )(a_bf16, x, w1, b1, w2, b2, wfc, bfc)


def _lastlayer_call(a_bf16, x, w1, b1, w2, b2):
    n = a_bf16.shape[0]
    f = x.shape[1]
    flops = 2 * n * (n * f + f * H1 + H1 * H2 + n * H2)
    bytes_accessed = (n * n * 2 + n * f * 4 + f * H1 * 2 + H1 * 4
                      + H1 * H2 * 2 + H2 * 4 + n * H2 * 4)
    return pl.pallas_call(
        _gcn_lastlayer_kernel,
        in_specs=[_VMEM] * 6,
        out_specs=_VMEM,
        out_shape=jax.ShapeDtypeStruct((n, H2), jnp.float32),
        cost_estimate=pl.CostEstimate(flops=flops, transcendentals=0,
                                      bytes_accessed=bytes_accessed),
    )(a_bf16, x, w1, b1, w2, b2)


# ------------------------------- glue (JAX) -----------------------------------

def normalized_adjacency(edge_index, num_nodes):
    """PyG GCNConv gcn_norm: self-loops + symmetric normalization (f32)."""
    src = edge_index[0]
    dst = edge_index[1]
    a = jnp.zeros((num_nodes, num_nodes), jnp.float32)
    a = a.at[dst, src].add(1.0)                      # message flows src -> dst
    a = a + jnp.eye(num_nodes, dtype=jnp.float32)    # self loops
    deg = a.sum(axis=1)
    dinv = jnp.where(deg > 0, 1.0 / jnp.sqrt(deg), 0.0)
    return dinv[:, None] * a * dinv[None, :]


def prepare_adjacency(edge_index, num_nodes):
    """Build + normalize + cast the dense adjacency ONCE; reuse every call."""
    return normalized_adjacency(edge_index, num_nodes).astype(jnp.bfloat16)


def init_params(key, input_features, output_features):
    k1, k2, k3 = jax.random.split(key, 3)
    scale = 0.1
    return {
        "w1": scale * jax.random.normal(k1, (input_features, H1), jnp.float32),
        "b1": jnp.zeros((H1,), jnp.float32),
        "w2": scale * jax.random.normal(k2, (H1, H2), jnp.float32),
        "b2": jnp.zeros((H2,), jnp.float32),
        "w_fc": scale * jax.random.normal(k3, (H2, output_features), jnp.float32),
        "b_fc": jnp.zeros((output_features,), jnp.float32),
    }


def prepare_params(params, output_features):
    """One-time: cast MXU weights to bf16, pad fc to OUT_PAD, reshape biases."""
    wfc = jnp.zeros((H2, OUT_PAD), jnp.float32).at[:, :output_features].set(params["w_fc"])
    bfc = jnp.zeros((OUT_PAD,), jnp.float32).at[:output_features].set(params["b_fc"])
    return {
        "w1": params["w1"].astype(jnp.bfloat16),
        "b1": params["b1"].reshape(1, H1),
        "w2": params["w2"].astype(jnp.bfloat16),
        "b2": params["b2"].reshape(1, H2),
        "w_fc": wfc.astype(jnp.bfloat16),
        "b_fc": bfc.reshape(1, OUT_PAD),
    }


@functools.partial(jax.jit, static_argnames=("output_features", "return_last_layer"))
def gcn_forward(prepped, x, a_hat_bf16, output_features=1, return_last_layer=False):
    """Forward pass: one fused Pallas call; no wrapper-side pad/cast ops."""
    if return_last_layer:
        return _lastlayer_call(a_hat_bf16, x,
                               prepped["w1"], prepped["b1"],
                               prepped["w2"], prepped["b2"])
    out_pad = _logits_call(a_hat_bf16, x,
                           prepped["w1"], prepped["b1"],
                           prepped["w2"], prepped["b2"],
                           prepped["w_fc"], prepped["b_fc"])
    return out_pad[:, :output_features]


def gcn_reference(params, x, a_hat, return_last_layer=False):
    """Pure f32 JAX reference (matches the PyTorch module in eval mode)."""
    h1 = jax.nn.relu(a_hat @ (x @ params["w1"]) + params["b1"])
    h2 = jax.nn.relu(a_hat @ (h1 @ params["w2"]) + params["b2"])
    if return_last_layer:
        return h2
    return h2 @ params["w_fc"] + params["b_fc"]


# --------------------------------- main ---------------------------------------

if __name__ == "__main__":
    input_features = 100
    output_features = 1
    num_nodes = 16

    key = jax.random.PRNGKey(0)
    kx, kp = jax.random.split(key)

    # Node features (N, F_in)
    x = jax.random.normal(kx, (num_nodes, input_features), jnp.float32)

    # Undirected cycle graph as edge_index (2, E), E = 2 * N
    fwd_src = jnp.arange(num_nodes, dtype=jnp.int32)
    fwd_dst = (fwd_src + 1) % num_nodes
    edge_index = jnp.stack(
        [jnp.concatenate([fwd_src, fwd_dst]),
         jnp.concatenate([fwd_dst, fwd_src])],
        axis=0,
    )

    params = init_params(kp, input_features, output_features)
    prepped = prepare_params(params, output_features)

    # Hoisted one-time work: dense normalized adjacency in f32 (reference) and
    # its bf16 copy for the kernel (no per-call casts).
    a_hat_f32 = normalized_adjacency(edge_index, num_nodes)
    a_hat_bf16 = prepare_adjacency(edge_index, num_nodes)

    out = gcn_forward(prepped, x, a_hat_bf16, output_features=output_features)
    out = jax.block_until_ready(out)
    assert out.shape == (num_nodes, output_features)

    last = jax.block_until_ready(
        gcn_forward(prepped, x, a_hat_bf16, output_features=output_features,
                    return_last_layer=True))
    assert last.shape == (num_nodes, H2)

    # Loose-tolerance check vs pure-f32 reference (bf16 MXU operands).
    ref_out = gcn_reference(params, x, a_hat_f32)
    ref_last = gcn_reference(params, x, a_hat_f32, return_last_layer=True)
    np.testing.assert_allclose(np.asarray(out), np.asarray(ref_out),
                               rtol=5e-2, atol=5e-2)
    np.testing.assert_allclose(np.asarray(last), np.asarray(ref_last),
                               rtol=5e-2, atol=5e-2)

    print("KERNEL_OK")
</pallas_src>

<mosaic_0001>
module attributes {stable_mosaic.version = 11 : i64} {
  func.func @_gcn_logits_kernel(%arg0: memref<16x16xbf16, #tpu.memory_space<vmem>>, %arg1: memref<16x100xf32, #tpu.memory_space<vmem>>, %arg2: memref<100x256xbf16, #tpu.memory_space<vmem>>, %arg3: memref<1x256xf32, #tpu.memory_space<vmem>>, %arg4: memref<256x128xbf16, #tpu.memory_space<vmem>>, %arg5: memref<1x128xf32, #tpu.memory_space<vmem>>, %arg6: memref<128x128xbf16, #tpu.memory_space<vmem>>, %arg7: memref<1x128xf32, #tpu.memory_space<vmem>>, %arg8: memref<16x128xf32, #tpu.memory_space<vmem>>) attributes {dimension_semantics = [], scalar_prefetch = 0 : i64, scratch_operands = 0 : i64, tpu.core_type = #tpu.core_type<tc>} {
    %c0 = arith.constant 0 : index
    %c0_0 = arith.constant 0 : index
    %0 = vector.load %arg0[%c0, %c0_0] : memref<16x16xbf16, #tpu.memory_space<vmem>>, vector<16x16xbf16>
    %c0_1 = arith.constant 0 : index
    %c0_2 = arith.constant 0 : index
    %1 = vector.load %arg1[%c0_1, %c0_2] : memref<16x100xf32, #tpu.memory_space<vmem>>, vector<16x100xf32>
    %2 = arith.truncf %1 : vector<16x100xf32> to vector<16x100xbf16>
    %cst = arith.constant dense<0.000000e+00> : vector<16x100xf32>
    %3 = tpu.matmul %0, %2, %cst {dimension_numbers = #tpu.dot_dimension_numbers<[1], [0], [0], [1], [0, 0, 1, 1], [], []>} : vector<16x16xbf16>, vector<16x100xbf16>, vector<16x100xf32> -> vector<16x100xf32>
    %4 = arith.truncf %3 : vector<16x100xf32> to vector<16x100xbf16>
    %c0_3 = arith.constant 0 : index
    %c0_4 = arith.constant 0 : index
    %5 = vector.load %arg2[%c0_3, %c0_4] : memref<100x256xbf16, #tpu.memory_space<vmem>>, vector<100x256xbf16>
    %cst_5 = arith.constant dense<0.000000e+00> : vector<16x256xf32>
    %6 = tpu.matmul %4, %5, %cst_5 {dimension_numbers = #tpu.dot_dimension_numbers<[1], [0], [0], [1], [0, 0, 1, 1], [], []>} : vector<16x100xbf16>, vector<100x256xbf16>, vector<16x256xf32> -> vector<16x256xf32>
    %c0_6 = arith.constant 0 : index
    %c0_7 = arith.constant 0 : index
    %7 = vector.load %arg3[%c0_6, %c0_7] : memref<1x256xf32, #tpu.memory_space<vmem>>, vector<1x256xf32>
    %8 = vector.broadcast %7 : vector<1x256xf32> to vector<16x256xf32>
    %9 = arith.addf %6, %8 : vector<16x256xf32>
    %cst_8 = arith.constant 0.000000e+00 : f32
    %10 = vector.broadcast %cst_8 : f32 to vector<16x256xf32>
    %11 = arith.maximumf %9, %10 : vector<16x256xf32>
    %12 = arith.truncf %11 : vector<16x256xf32> to vector<16x256xbf16>
    %c0_9 = arith.constant 0 : index
    %c0_10 = arith.constant 0 : index
    %13 = vector.load %arg4[%c0_9, %c0_10] : memref<256x128xbf16, #tpu.memory_space<vmem>>, vector<256x128xbf16>
    %cst_11 = arith.constant dense<0.000000e+00> : vector<16x128xf32>
    %14 = tpu.matmul %12, %13, %cst_11 {dimension_numbers = #tpu.dot_dimension_numbers<[1], [0], [0], [1], [0, 0, 1, 1], [], []>} : vector<16x256xbf16>, vector<256x128xbf16>, vector<16x128xf32> -> vector<16x128xf32>
    %15 = arith.truncf %14 : vector<16x128xf32> to vector<16x128xbf16>
    %cst_12 = arith.constant dense<0.000000e+00> : vector<16x128xf32>
    %16 = tpu.matmul %0, %15, %cst_12 {dimension_numbers = #tpu.dot_dimension_numbers<[1], [0], [0], [1], [0, 0, 1, 1], [], []>} : vector<16x16xbf16>, vector<16x128xbf16>, vector<16x128xf32> -> vector<16x128xf32>
    %c0_13 = arith.constant 0 : index
    %c0_14 = arith.constant 0 : index
    %17 = vector.load %arg5[%c0_13, %c0_14] : memref<1x128xf32, #tpu.memory_space<vmem>>, vector<1x128xf32>
    %18 = vector.broadcast %17 : vector<1x128xf32> to vector<16x128xf32>
    %19 = arith.addf %16, %18 : vector<16x128xf32>
    %cst_15 = arith.constant 0.000000e+00 : f32
    %20 = vector.broadcast %cst_15 : f32 to vector<16x128xf32>
    %21 = arith.maximumf %19, %20 : vector<16x128xf32>
    %22 = arith.truncf %21 : vector<16x128xf32> to vector<16x128xbf16>
    %c0_16 = arith.constant 0 : index
    %c0_17 = arith.constant 0 : index
    %23 = vector.load %arg6[%c0_16, %c0_17] : memref<128x128xbf16, #tpu.memory_space<vmem>>, vector<128x128xbf16>
    %cst_18 = arith.constant dense<0.000000e+00> : vector<16x128xf32>
    %24 = tpu.matmul %22, %23, %cst_18 {dimension_numbers = #tpu.dot_dimension_numbers<[1], [0], [0], [1], [0, 0, 1, 1], [], []>} : vector<16x128xbf16>, vector<128x128xbf16>, vector<16x128xf32> -> vector<16x128xf32>
    %c0_19 = arith.constant 0 : index
    %c0_20 = arith.constant 0 : index
    %25 = vector.load %arg7[%c0_19, %c0_20] : memref<1x128xf32, #tpu.memory_space<vmem>>, vector<1x128xf32>
    %26 = vector.broadcast %25 : vector<1x128xf32> to vector<16x128xf32>
    %27 = arith.addf %24, %26 : vector<16x128xf32>
    %c0_21 = arith.constant 0 : index
    %c0_22 = arith.constant 0 : index
    %28 = vector.load %arg8[%c0_21, %c0_22] : memref<16x128xf32, #tpu.memory_space<vmem>>, vector<16x128xf32>
    tpu.vector_store %arg8[%c0_21, %c0_22], %27 {strides = array<i32>} : memref<16x128xf32, #tpu.memory_space<vmem>>, vector<16x128xf32>,
    return
  }
}

</mosaic_0001>

<bundles_post_ra>
// kernel: gcn_forward.1
= control target key start
LH: loop header
LB: loop body
LE: loop exit
PB: predicated region body
PF: predicated region fallthrough
CT: control target
= control target key end

     0   :  { %13 = vsyncpa [#allocation3], 0  ;;  %s1047_s0 = inlined_call_operand.vmem [shape: bf16[16,16], index: 0, kind: input, shape index: {}]   ;;  %s1048_s1 = inlined_call_operand.vmem [shape: f32[16,100], index: 1, kind: input, shape index: {}]   ;;  %s1049_s2 = inlined_call_operand.hbm [shape: bf16[100,256], index: 2, kind: input, shape index: {}]   ;;  %s1050_s3 = inlined_call_operand.hbm [shape: f32[1,256], index: 3, kind: input, shape index: {}]   ;;  %s1051_s4 = inlined_call_operand.hbm [shape: bf16[256,128], index: 4, kind: input, shape index: {}]   ;;  %s1052_s5 = inlined_call_operand.vmem [shape: f32[1,128], index: 5, kind: input, shape index: {}]   ;;  %s1053_s6 = inlined_call_operand.hbm [shape: bf16[128,128], index: 6, kind: input, shape index: {}]   ;;  %s1054_s7 = inlined_call_operand.vmem [shape: f32[1,128], index: 7, kind: input, shape index: {}]   ;;  %s1055_s8 = inlined_call_operand.vmem [shape: f32[16,128], index: 8, kind: output, shape index: {}]  }
   0x1   :  { %14 = vsyncpa [#allocation5], 0 }
   0x2   :  { %15 = vsyncpa [#allocation8], 0  ;;  %s893_s27 = smov [#allocation4]   ;;  %s894_s29 = smov [#allocation2]  }
   0x3   :  { %s38_s28 = sshll.u32 %s893_s27, 4  ;;  %s25_s30 = sshll.u32 %s894_s29, 4  ;;  %s39_s28 = int_to_ptr.vmem [resolvable:$true] %s38_s28  ;;  %s949_s30 = int_to_ptr.vmem [resolvable:$true] %s25_s30 }
   0x4   :  { %s799_s11 = scalar_lea.hbm %s1050_s3, 32 }
   0x5   :  { %p800_p0 = scmp.ne.s32.totalorder %s1050_s3, %s799_s11  ;;  %p803_p1 = scmp.lt.u32.totalorder %s799_s11, %s1050_s3 }
   0x7   :  { %p805_p2 = pnand %p803_p1, %p800_p0 }
   0x9   :  { %808 = shalt.err (!%p805_p2)
}
   0xa   :  { %s809_s16 = scalar_lea.vmem %s39_s28, 32  ;;  %p814_p4 = scmp.lt.s32.totalorder %s39_s28, %s39_s28 }
   0xb   :  { %p810_p3 = scmp.ne.s32.totalorder %s39_s28, %s809_s16  ;;  %p815_p5 = scmp.lt.s32.totalorder %s809_s16, %s809_s16 }
   0xd   :  { %p816_p6 = por %p815_p5, %p814_p4 }
   0xf   :  { %p817_p7 = pnand %p816_p6, %p810_p3 }
  0x11   :  { %820 = shalt.err (!%p817_p7)
}
  0x12   :  { %41 = dma.hbm_to_vmem [thread:$0]  %s1050_s3, 32, %s39_s28, [#allocation5]  }
  0x13   :  { %s821_s21 = scalar_lea.hbm %s1049_s2, 1664 }
  0x14   :  { %p822_p8 = scmp.ne.s32.totalorder %s1049_s2, %s821_s21  ;;  %p825_p9 = scmp.lt.u32.totalorder %s821_s21, %s1049_s2 }
  0x16   :  { %p827_p10 = pnand %p825_p9, %p822_p8 }
  0x18   :  { %830 = shalt.err (!%p827_p10)
}
  0x19   :  { %s831_s26 = scalar_lea.vmem %s949_s30, 1664  ;;  %p836_p12 = scmp.lt.s32.totalorder %s949_s30, %s949_s30 }
  0x1a   :  { %p832_p11 = scmp.ne.s32.totalorder %s949_s30, %s831_s26  ;;  %p837_p13 = scmp.lt.s32.totalorder %s831_s26, %s831_s26 }
  0x1c   :  { %p838_p0 = por %p837_p13, %p836_p12 }
  0x1e   :  { %p839_p1 = pnand %p838_p0, %p832_p11 }
  0x20   :  { %842 = shalt.err (!%p839_p1)
}
  0x21   :  { %s895_s3 = smov 128   ;;  %s896_s27 = smov 8  }
  0x22   :  { %31 = dma.hbm_to_vmem [thread:$0]  %s1049_s2, 1664, %s949_s30, [#allocation3], %s895_s3, %s895_s3, %s896_s27  }
  0x23   :  { %s897_s9 = smov [#allocation6]   ;;  %s843_s13 = scalar_lea.hbm %s1051_s4, 2048 }
  0x24   :  { %s47_s10 = sshll.u32 %s897_s9, 4  ;;  %p844_p2 = scmp.ne.s32.totalorder %s1051_s4, %s843_s13  ;;  %s48_s10 = int_to_ptr.vmem [resolvable:$true] %s47_s10 }
  0x25   :  { %p847_p3 = scmp.lt.u32.totalorder %s843_s13, %s1051_s4 }
  0x27   :  { %p849_p4 = pnand %p847_p3, %p844_p2 }
  0x29   :  { %852 = shalt.err (!%p849_p4)
}
  0x2a   :  { %s853_s18 = scalar_lea.vmem %s48_s10, 2048  ;;  %p858_p6 = scmp.lt.s32.totalorder %s48_s10, %s48_s10 }
  0x2b   :  { %p854_p5 = scmp.ne.s32.totalorder %s48_s10, %s853_s18  ;;  %p859_p7 = scmp.lt.s32.totalorder %s853_s18, %s853_s18 }
  0x2d   :  { %p860_p8 = por %p859_p7, %p858_p6 }
  0x2f   :  { %p861_p9 = pnand %p860_p8, %p854_p5 }
  0x31   :  { %864 = shalt.err (!%p861_p9)
}
  0x32   :  { %s898_s2 = smov 64   ;;  %s899_s30 = smov 4  }
  0x33   :  { %53 = dma.hbm_to_vmem [thread:$0]  %s1051_s4, 2048, %s48_s10, [#allocation5], %s898_s2, %s898_s2, %s899_s30  }
  0x34   :  { %s900_s21 = smov [#allocation7]   ;;  %s865_s25 = scalar_lea.hbm %s1053_s6, 1024 }
  0x35   :  { %s61_s22 = sshll.u32 %s900_s21, 4  ;;  %p866_p10 = scmp.ne.s32.totalorder %s1053_s6, %s865_s25  ;;  %s62_s22 = int_to_ptr.vmem [resolvable:$true] %s61_s22 }
  0x36   :  { %p869_p11 = scmp.lt.u32.totalorder %s865_s25, %s1053_s6 }
  0x38   :  { %p871_p12 = pnand %p869_p11, %p866_p10 }
  0x3a   :  { %874 = shalt.err (!%p871_p12)
}
  0x3b   :  { %s875_s29 = scalar_lea.vmem %s62_s22, 1024  ;;  %p880_p0 = scmp.lt.s32.totalorder %s62_s22, %s62_s22 }
  0x3c   :  { %p876_p13 = scmp.ne.s32.totalorder %s62_s22, %s875_s29  ;;  %p881_p1 = scmp.lt.s32.totalorder %s875_s29, %s875_s29 }
  0x3e   :  { %p882_p2 = por %p881_p1, %p880_p0 }
  0x40   :  { %p883_p3 = pnand %p882_p2, %p876_p13 }
  0x42   :  { %886 = shalt.err (!%p883_p3)
}
  0x43   :  { %67 = dma.hbm_to_vmem [thread:$0]  %s1053_s6, 1024, %s62_s22, [#allocation8], %s898_s2, %s898_s2, %s899_s30  }
  0x44   :  { %887 = dma.done.wait [#allocation3], 1664  }
  0x45   :  { %888 = vsyncadd [#allocation3], 4294965632 }
  0x46   :  { %889 = dma.done.wait [#allocation5], 2080  }
  0x47   :  { %890 = vsyncadd [#allocation5], 4294965216 }
  0x48   :  { %891 = dma.done.wait [#allocation8], 1024  }
  0x49   :  { %892 = vsyncadd [#allocation8], 4294966272  ;;  %v901_v0 = vmov 0.0   ;;  %vm902_vm0 = vmmov 0   ;;  %v85_v1 = vld [vmem:[%s1048_s1] sm:$0xff]  ;;  %v86_v2 = vld [vmem:[%s1048_s1 + $0x8] sm:$0xff]  ;;  %v154_v43 = vlaneseq }
  0x4a   :  { %711 = vmatprep.subr.bf16.mxu1 %v901_v0  ;;  %713 = vmatprep.mubr.msk.bf16.mxu1 %vm902_vm0, %v901_v0  ;;  %v87_v3 = vpack.c.bf16 %v86_v2, %v85_v1  ;;  %v1016_v4 = vld [vmem:[%s1047_s0] sm:$0xff]   ;;  %vm93_vm1 = vcmask 130048   ;;  %v760_v7 = vld [vmem:[#allocation2 + $0x14] ss:$8 sps:$4 sm:$0xff]   ;;  %v758_v8 = vld [vmem:[#allocation2 + $0x10] ss:$8 sps:$4 sm:$0xff]  }
  0x4b   :  { %v757_v5 = vld [vmem:[#allocation2 + $0x4] ss:$8 sps:$4 sm:$0xff]   ;;  %v755_v6 = vld [vmem:[#allocation2] ss:$8 sps:$4 sm:$0xff]   ;;  %v766_v11 = vld [vmem:[#allocation2 + $0x34] ss:$8 sps:$4 sm:$0xff]  }
  0x4c   :  { %712 = vmatpush3.bf16.msra.mxu1 %v87_v3  ;;  %v763_v9 = vld [vmem:[#allocation2 + $0x24] ss:$8 sps:$4 sm:$0xff]   ;;  %v761_v10 = vld [vmem:[#allocation2 + $0x20] ss:$8 sps:$4 sm:$0xff]   ;;  %v764_v12 = vld [vmem:[#allocation2 + $0x30] ss:$8 sps:$4 sm:$0xff]  }
  0x4d   :  { %240 = vmatprep.subr.bf16.mxu1 %v757_v5  ;;  %v769_v13 = vld [vmem:[#allocation2 + $0x44] ss:$8 sps:$4 sm:$0xff]   ;;  %v767_v14 = vld [vmem:[#allocation2 + $0x40] ss:$8 sps:$4 sm:$0xff]   ;;  %v772_v15 = vld [vmem:[#allocation2 + $0x54] ss:$8 sps:$4 sm:$0xff]  }
  0x4e   :  { %v770_v16 = vld [vmem:[#allocation2 + $0x50] ss:$8 sps:$4 sm:$0xff]   ;;  %v151_v17 = vld [vmem:[#allocation2 + $0x60] sm:$0x33]  ;;  %vm233_vm2 = vcmask 1041408   ;;  %v903_v21 = vmov 0  }
  0x4f   :  { %714 = vmatmul.mubr.msk.bf16.vlgmr.msra.gmra.mrb[0].mxu1 %vm93_vm1, %v1016_v4  ;;  %v646_v18 = vcombine.high %v151_v17, %v151_v17  ;;  %v645_v19 = vcombine.low %v151_v17, %v151_v17  ;;  %v775_v22 = vld [vmem:[#allocation6 + $0x40] sm:$0xff]   ;;  %v777_v24 = vld [vmem:[#allocation6 + $0x48] sm:$0xff]   ;;  %v779_v26 = vld [vmem:[#allocation6 + $0x50] sm:$0xff]   ;;  %vm229_vm3 = vcmask 818176   ;;  %v155_v44 = vshrl.u32 %v154_v43, 7 }
  0x50   :  { %241 = vmatpush1.bf16.msra.mxu1 %v755_v6  ;;  %272 = vmatprep.mubr.bf16.mxu1 %v903_v21  ;;  %v776_v23 = vld [vmem:[#allocation6] sm:$0xff]   ;;  %v778_v25 = vld [vmem:[#allocation6 + $0x8] sm:$0xff]   ;;  %v780_v27 = vld [vmem:[#allocation6 + $0x10] sm:$0xff]  }
  0x51   :  { %242 = vmatprep.subr.bf16.mxu1 %v760_v7  ;;  %v235_v20 = vsel %vm233_vm2, %v645_v19, 0  ;;  %678 = vmatprep.subr.bf16.mxu0 %v775_v22  ;;  %v781_v28 = vld [vmem:[#allocation6 + $0x58] sm:$0xff]   ;;  %v783_v30 = vld [vmem:[#allocation6 + $0x60] sm:$0xff]   ;;  %v785_v32 = vld [vmem:[#allocation6 + $0x68] sm:$0xff]   ;;  %v156_v45 = vsub.s32 0, %v155_v44  ;;  %v160_v47 = vsub.s32 1, %v155_v44 }
  0x52   :  { %679 = vmatpush3.bf16.msra.mxu0 %v776_v23  ;;  %v782_v29 = vld [vmem:[#allocation6 + $0x18] sm:$0xff]   ;;  %v784_v31 = vld [vmem:[#allocation6 + $0x20] sm:$0xff]   ;;  %v786_v38 = vld [vmem:[#allocation6 + $0x28] sm:$0xff]  }
  0x53   :  { %680 = vmatprep.subr.bf16.mxu0 %v777_v24  ;;  %v787_v39 = vld [vmem:[#allocation6 + $0x70] sm:$0xff]   ;;  %v789_v41 = vld [vmem:[#allocation6 + $0x78] sm:$0xff]   ;;  %v791_v1 = vld [vmem:[#allocation7] sm:$0xff]  }
  0x54   :  { %243 = vmatpush1.bf16.msra.mxu1 %v758_v8  ;;  %v788_v40 = vld [vmem:[#allocation6 + $0x30] sm:$0xff]   ;;  %v790_v42 = vld [vmem:[#allocation6 + $0x38] sm:$0xff]   ;;  %v792_v2 = vld [vmem:[#allocation7 + $0x8] sm:$0xff]  }
  0x55   :  { %244 = vmatprep.subr.bf16.mxu1 %v763_v9  ;;  %v152_v46 = vld [vmem:[#allocation4] sm:$0x3]  ;;  %v793_v3 = vld [vmem:[#allocation7 + $0x10] sm:$0xff]   ;;  %v795_v6 = vld [vmem:[#allocation7 + $0x20] sm:$0xff]  }
  0x56   :  { %681 = vmatpush3.bf16.msra.mxu0 %v778_v25  ;;  %v157_v48 = vrot.slane %v152_v46, %v156_v45  ;;  %v161_v49 = vrot.slane %v152_v46, %v160_v47  ;;  %v794_v5 = vld [vmem:[#allocation7 + $0x18] sm:$0xff]   ;;  %v796_v7 = vld [vmem:[#allocation7 + $0x28] sm:$0xff]  }
  0x57   :  { %682 = vmatprep.subr.bf16.mxu0 %v779_v26  ;;  %v665_v17 = vld [vmem:[%s1052_s5] ss:$0 sm:$0xff] }
  0x58   :  { %245 = vmatpush1.bf16.msra.mxu1 %v761_v10 }
  0x59   :  { %246 = vmatprep.subr.bf16.mxu1 %v766_v11 }
  0x5a   :  { %683 = vmatpush3.bf16.msra.mxu0 %v780_v27 }
  0x5b   :  { %684 = vmatprep.subr.bf16.mxu0 %v781_v28 }
  0x5c   :  { %247 = vmatpush1.bf16.msra.mxu1 %v764_v12 }
  0x5d   :  { %248 = vmatprep.subr.bf16.mxu1 %v769_v13 }
  0x5e   :  { %685 = vmatpush3.bf16.msra.mxu0 %v782_v29 }
  0x5f   :  { %686 = vmatprep.subr.bf16.mxu0 %v783_v30 }
  0x60   :  { %249 = vmatpush1.bf16.msra.mxu1 %v767_v14 }
  0x61   :  { %250 = vmatprep.subr.bf16.mxu1 %v772_v15  ;;  %v797_v15 = vld [vmem:[#allocation7 + $0x30] sm:$0xff]  }
  0x62   :  { %687 = vmatpush3.bf16.msra.mxu0 %v784_v31 }
  0x63   :  { %688 = vmatprep.subr.bf16.mxu0 %v785_v32 }
  0x64   :  { %251 = vmatpush1.bf16.msra.mxu1 %v770_v16  ;;  %v798_v16 = vld [vmem:[#allocation7 + $0x38] sm:$0xff]  }
  0x65   :  { %647 = vmatprep.subr.msk.bf16.mxu1 %vm233_vm2, %v646_v18 }
  0x66   :  { %689 = vmatpush3.bf16.msra.mxu0 %v786_v38 }
  0x67   :  { %690 = vmatprep.subr.bf16.mxu0 %v787_v39 }
  0x68   :  { %253 = vmatpush1.bf16.msra.mxu1 %v235_v20 }
  0x69   :  { %717 = vmatprep.subr.bf16.mxu1 %v901_v0 }
  0x6a   :  { %691 = vmatpush3.bf16.msra.mxu0 %v788_v40 }
  0x6b   :  { %692 = vmatprep.subr.bf16.mxu0 %v789_v41 }
  0x6e   :  { %693 = vmatpush3.bf16.msra.mxu0 %v790_v42 }
  0x6f   :  { %723 = vmatprep.subr.bf16.mxu0 %v901_v0 }
 0x122   :  { %v131_v33 = vpop.f32.mrb[0].mxu1 }
 0x123   :  { %v715_v34 = vpop.f32.mrb[1].mxu1 }
 0x124   :  { %v134_v35 = vpop.f32.mrb[2].mxu1 }
 0x125   :  { %v138_v36 = vpack.c.bf16 %v134_v35, %v131_v33  ;;  %v716_v37 = vpop.f32.mrb[3].mxu1 }
 0x127   :  { %648 = vmatmul.mubr.msk.bf16.vlgmr.msra.gmra.mrb[4].mxu1 %vm229_vm3, %v138_v36 }
 0x128   :  { %719 = vmatprep.mubr.msk.bf16.mxu1 %vm902_vm0, %v901_v0 }
 0x1fa   :  { %v274_v50 = vpop.f32.mrb[4].mxu1 }
 0x1fb   :  { %v275_v51 = vadd.f32 %v274_v50, %v157_v48  ;;  %v276_v52 = vpop.f32.mrb[5].mxu1 }
 0x1fc   :  { %v277_v53 = vadd.f32 %v276_v52, %v161_v49  ;;  %v278_v54 = vpop.f32.mrb[6].mxu1 }
 0x1fd   :  { %v279_v55 = vadd.f32 %v278_v54, %v157_v48  ;;  %v280_v56 = vpop.f32.mrb[7].mxu1  ;;  %v283_v58 = vmax.f32 %v275_v51, 0.0 }
 0x1fe   :  { %v281_v57 = vadd.f32 %v280_v56, %v161_v49  ;;  %v284_v60 = vmax.f32 %v277_v53, 0.0 }
 0x1ff   :  { %v285_v59 = vmax.f32 %v279_v55, 0.0 }
 0x200   :  { %v286_v61 = vmax.f32 %v281_v57, 0.0 }
 0x201   :  { %v287_v62 = vpack.c.bf16 %v285_v59, %v283_v58 }
 0x202   :  { %v288_v63 = vpack.c.bf16 %v286_v61, %v284_v60 }
 0x204   :  { %449 = vmatprep.mubr.bf16.mxu0 %v288_v63 }
 0x205   :  { %450 = vmatmul.mubr.bf16.vlgmr.msra.gmra.mrb[0].mxu0 %v287_v62 }
 0x206   :  { %739 = vmatprep.mubr.msk.bf16.mxu0 %vm902_vm0, %v901_v0  ;;  %724 = vmatpush3.bf16.msra.mxu0 %v791_v1 }
 0x207   :  { %725 = vmatprep.subr.bf16.mxu0 %v901_v0 }
 0x20a   :  { %726 = vmatpush3.bf16.msra.mxu0 %v792_v2 }
 0x20b   :  { %727 = vmatprep.subr.bf16.mxu0 %v901_v0 }
 0x20e   :  { %728 = vmatpush3.bf16.msra.mxu0 %v793_v3 }
 0x20f   :  { %729 = vmatprep.subr.bf16.mxu0 %v901_v0 }
 0x212   :  { %730 = vmatpush3.bf16.msra.mxu0 %v794_v5 }
 0x213   :  { %731 = vmatprep.subr.bf16.mxu0 %v901_v0 }
 0x216   :  { %732 = vmatpush3.bf16.msra.mxu0 %v795_v6 }
 0x217   :  { %733 = vmatprep.subr.bf16.mxu0 %v901_v0 }
 0x21a   :  { %734 = vmatpush3.bf16.msra.mxu0 %v796_v7 }
 0x21b   :  { %735 = vmatprep.subr.bf16.mxu0 %v901_v0 }
 0x21e   :  { %736 = vmatpush3.bf16.msra.mxu0 %v797_v15 }
 0x21f   :  { %737 = vmatprep.subr.bf16.mxu0 %v901_v0  ;;  %v667_v0 = vld [vmem:[%s1054_s7] ss:$0 sm:$0xff] }
 0x222   :  { %738 = vmatpush3.bf16.msra.mxu0 %v798_v16 }
 0x2d8   :  { %v694_v8 = vpop.f32.mrb[0].mxu0 }
 0x2d9   :  { %v695_v9 = vpop.f32.mrb[1].mxu0 }
 0x2da   :  { %v696_v10 = vadd.f32 %v695_v9, %v694_v8  ;;  %v697_v11 = vpop.f32.mrb[2].mxu0 }
 0x2db   :  { %v698_v12 = vpop.f32.mrb[3].mxu0 }
 0x2dc   :  { %v699_v13 = vadd.f32 %v698_v12, %v697_v11 }
 0x2de   :  { %v458_v14 = vpack.c.bf16 %v699_v13, %v696_v10 }
 0x2e0   :  { %718 = vmatpush3.bf16.msra.mxu1 %v458_v14 }
 0x2e3   :  { %720 = vmatmul.mubr.msk.bf16.vlgmr.msra.gmra.mrb[8].mxu1 %vm93_vm1, %v1016_v4 }
 0x3b6   :  { %v500_v18 = vpop.f32.mrb[8].mxu1 }
 0x3b7   :  { %v501_v19 = vadd.f32 %v665_v17, %v500_v18  ;;  %v721_v20 = vpop.f32.mrb[9].mxu1 }
 0x3b8   :  { %v503_v21 = vpop.f32.mrb[10].mxu1 }
 0x3b9   :  { %v504_v22 = vadd.f32 %v665_v17, %v503_v21  ;;  %v722_v23 = vpop.f32.mrb[11].mxu1  ;;  %v507_v24 = vmax.f32 %v501_v19, 0.0 }
 0x3bb   :  { %v508_v25 = vmax.f32 %v504_v22, 0.0 }
 0x3bd   :  { %v509_v26 = vpack.c.bf16 %v508_v25, %v507_v24 }
 0x3bf   :  { %740 = vmatmul.mubr.bf16.vlgmr.msra.gmra.mrb[4].mxu0 %v509_v26 }
 0x492   :  { %v615_v4 = vpop.f32.mrb[4].mxu0 }
 0x493   :  { %v616_v27 = vadd.f32 %v667_v0, %v615_v4  ;;  %v741_v28 = vpop.f32.mrb[5].mxu0 }
 0x494   :  { %v618_v29 = vpop.f32.mrb[6].mxu0 }
 0x495   :  { %622 = vst [vmem:[%s1055_s8] sm:$0xff] %v616_v27  ;;  %v619_v30 = vadd.f32 %v667_v0, %v618_v29  ;;  %v742_v31 = vpop.f32.mrb[7].mxu0 }
 0x497   :  { %623 = vst [vmem:[%s1055_s8 + $0x8] sm:$0xff] %v619_v30 }
 0x498   :  { %628 = vsyncpa [#allocation3], 1 }
 0x499   :  { %629 = vsyncpa [#allocation5], 1 }
 0x49a   :  { %630 = vsyncpa [#allocation8], 1 }

</bundles_post_ra>
